<compile_context>
chip_gen: v7x
topology: tpu7x:2x2x1
jax: 0.10.0
libtpu: 0.0.40
codegen_flags: <defaults>
</compile_context>

<pallas_src>
import functools

import jax
import jax.numpy as jnp
from jax import lax
from jax.experimental import pallas as pl
from jax.experimental.pallas import tpu as pltpu


def _round_up(x, m):
    return (x + m - 1) // m * m


def _bottleneck_kernel(xc_ref, xl_ref, xr_ref,
                       w1_ref, w2_ref, w3_ref,
                       b1_ref, b2_ref, b3_ref,
                       o_ref, *, K, pad_left, L_valid):
    """One (batch, length-tile) step.  Shapes (NLC layout, channel-padded):
       xc_ref: (1, T, Cio)  center tile (also the residual)
       xl_ref/xr_ref: (1, H, Cio)  left/right halo rows of the raw input
       w1: (Cio, Cm)  w2: (K*Cm, Cm)  w3: (Cm, Cio)   (bf16, BN scale folded)
       b1/b2: (1, Cm)  b3: (1, Cio)   (f32 BN shifts)
       o_ref: (1, T, Cio)
    """
    l = pl.program_id(1)
    T = xc_ref.shape[1]
    H = xl_ref.shape[1]

    xc = xc_ref[0]                                              # (T, Cio) f32
    x_ext = jnp.concatenate([xl_ref[0], xc, xr_ref[0]], axis=0)  # (T+2H, Cio)

    # ---- conv1 (1x1) + bn1 (scale folded into w1) + relu1; do1 = identity ----
    h = jnp.dot(x_ext.astype(jnp.bfloat16), w1_ref[...],
                preferred_element_type=jnp.float32)
    h = jnp.maximum(h + b1_ref[...], 0.0)                        # (T+2H, Cm)

    # Zero rows outside the valid sequence [0, L_valid): this is exactly the
    # SAME zero padding conv2 expects, and it kills BN-shifted garbage coming
    # from clamped halo blocks / host-side length padding.
    row = lax.broadcasted_iota(jnp.int32, (T + 2 * H, 1), 0)
    gpos = row + (l * T - H)
    h = jnp.where(jnp.logical_and(gpos >= 0, gpos < L_valid), h, 0.0)
    h = h.astype(jnp.bfloat16)

    # ---- conv2 (kernel K, stride 1, SAME) + bn2 + relu2; do2 = identity ----
    # K shifted taps laid side-by-side along lanes -> single fused MXU matmul.
    off = H - pad_left
    xcat = jnp.concatenate(
        [h[off + t: off + t + T, :] for t in range(K)], axis=-1)  # (T, K*Cm)
    h2 = jnp.dot(xcat, w2_ref[...], preferred_element_type=jnp.float32)
    h2 = jnp.maximum(h2 + b2_ref[...], 0.0)                      # (T, Cm)

    # ---- conv3 (1x1, 4x channels) + bn3 + relu3 + residual add ----
    h3 = jnp.dot(h2.astype(jnp.bfloat16), w3_ref[...],
                 preferred_element_type=jnp.float32)
    h3 = jnp.maximum(h3 + b3_ref[...], 0.0)                      # (T, Cio)
    o_ref[0] = (h3 + xc).astype(o_ref.dtype)


def _fold_bn(gamma, beta, mean, var, eps=1e-5):
    scale = gamma / jnp.sqrt(var + eps)
    shift = beta - mean * scale
    return scale, shift


def bottleneck_block1d_nlc(x_nlc, w1, w2, w3, bn1, bn2, bn3, *, l_tile=512):
    """NLC-native entry point: x_nlc (B, L, Cin) float32, weights in PyTorch
    layouts (w1:(Cm,Cin,1), w2:(Cm,Cm,K), w3:(4Cm,Cm,1)), bn* = (g,b,mean,var)."""
    B, L, Cin = x_nlc.shape
    Cmid, _, K = w2.shape
    assert Cin == 4 * Cmid, "residual add requires in_channels == 4*out_channels"
    # TODO(synk): stride>1 / downsample path and training-mode BN not implemented.

    pad_left = (K - 1) // 2

    s1, b1 = _fold_bn(*bn1)
    s2, b2 = _fold_bn(*bn2)
    s3, b3 = _fold_bn(*bn3)

    # ---- lane-dense channel padding and length tiling geometry ----
    Cm_p = _round_up(Cmid, 128)
    Cio_p = _round_up(Cin, 128)
    H = max(8, _round_up(K - 1, 8))                 # sublane-aligned halo
    T = max(H, _round_up(min(L, l_tile), H))        # length tile (multiple of H)
    Lp = _round_up(L, T)
    nL = Lp // T
    rH = T // H

    # ---- host-side weight prep: transpose, fold BN scale, zero-pad, bf16 ----
    w1t = jnp.transpose(w1[:, :, 0], (1, 0)) * s1[None, :]          # (Cin, Cm)
    w1p = jnp.zeros((Cio_p, Cm_p), jnp.float32).at[:Cin, :Cmid].set(w1t)
    w2t = jnp.transpose(w2, (2, 1, 0)) * s2[None, None, :]          # (K, Cm, Cm)
    w2p = jnp.zeros((K, Cm_p, Cm_p), jnp.float32).at[:, :Cmid, :Cmid].set(w2t)
    w2cat = w2p.reshape(K * Cm_p, Cm_p)
    w3t = jnp.transpose(w3[:, :, 0], (1, 0)) * s3[None, :]          # (Cm, Cin)
    w3p = jnp.zeros((Cm_p, Cio_p), jnp.float32).at[:Cmid, :Cin].set(w3t)

    w1p = w1p.astype(jnp.bfloat16)
    w2cat = w2cat.astype(jnp.bfloat16)
    w3p = w3p.astype(jnp.bfloat16)

    b1p = jnp.zeros((1, Cm_p), jnp.float32).at[0, :Cmid].set(b1)
    b2p = jnp.zeros((1, Cm_p), jnp.float32).at[0, :Cmid].set(b2)
    b3p = jnp.zeros((1, Cio_p), jnp.float32).at[0, :Cin].set(b3)

    # pad activation to (B, Lp, Cio_p); padded rows/channels are zero and are
    # masked / sliced away so semantics are unchanged.
    xp = jnp.pad(x_nlc, ((0, 0), (0, Lp - L), (0, Cio_p - Cin)))

    kernel = functools.partial(_bottleneck_kernel,
                               K=K, pad_left=pad_left, L_valid=L)

    const2 = lambda b, l: (0, 0)
    out = pl.pallas_call(
        kernel,
        out_shape=jax.ShapeDtypeStruct((B, Lp, Cio_p), jnp.float32),
        grid=(B, nL),
        in_specs=[
            # streamed activation tile (double-buffered by the pipeline)
            pl.BlockSpec((1, T, Cio_p), lambda b, l: (b, l, 0)),
            # left halo: last H rows of the previous tile (clamped at l == 0,
            # those rows are masked to zero in-kernel)
            pl.BlockSpec((1, H, Cio_p),
                         lambda b, l: (b, jnp.maximum(l * rH - 1, 0), 0)),
            # right halo: first H rows of the next tile (clamped at the end)
            pl.BlockSpec((1, H, Cio_p),
                         lambda b, l: (b, jnp.minimum((l + 1) * rH, Lp // H - 1), 0)),
            # weights / BN shifts: constant index_map -> stay VMEM-resident
            pl.BlockSpec((Cio_p, Cm_p), const2),
            pl.BlockSpec((K * Cm_p, Cm_p), const2),
            pl.BlockSpec((Cm_p, Cio_p), const2),
            pl.BlockSpec((1, Cm_p), const2),
            pl.BlockSpec((1, Cm_p), const2),
            pl.BlockSpec((1, Cio_p), const2),
        ],
        out_specs=pl.BlockSpec((1, T, Cio_p), lambda b, l: (b, l, 0)),
        compiler_params=pltpu.CompilerParams(
            dimension_semantics=("parallel", "parallel"),
            vmem_limit_bytes=32 * 1024 * 1024),
    )(xp, xp, xp, w1p, w2cat, w3p, b1p, b2p, b3p)

    return out[:, :L, :Cin]


def bottleneck_block1d(x_ncl, w1, w2, w3, bn1, bn2, bn3, *, l_tile=512):
    """PyTorch-compatible NCL interface.  For stacked blocks keep the data in
    NLC and call bottleneck_block1d_nlc directly to skip the two transposes."""
    out_nlc = bottleneck_block1d_nlc(jnp.transpose(x_ncl, (0, 2, 1)),
                                     w1, w2, w3, bn1, bn2, bn3, l_tile=l_tile)
    return jnp.transpose(out_nlc, (0, 2, 1))


# ---------------- pure-JAX reference (mirrors the PyTorch module) ------------
def _conv1d_same_ref(x, w, stride):
    k = w.shape[-1]
    in_dim = x.shape[-1]
    out_dim = (in_dim + stride - 1) // stride
    p = max(0, (out_dim - 1) * stride + k - in_dim)
    pad_l, pad_r = p // 2, p - p // 2
    xp = jnp.pad(x, ((0, 0), (0, 0), (pad_l, pad_r)))
    return lax.conv_general_dilated(xp, w, (stride,), 'VALID',
                                    dimension_numbers=('NCH', 'OIH', 'NCH'))


def _bn_ref(x, gamma, beta, mean, var, eps=1e-5):
    s = gamma / jnp.sqrt(var + eps)
    return x * s[None, :, None] + (beta - mean * s)[None, :, None]


def bottleneck_ref(x, w1, w2, w3, bn1, bn2, bn3):
    identity = x
    out = _conv1d_same_ref(x, w1, 1)
    out = jnp.maximum(_bn_ref(out, *bn1), 0.0)
    out = _conv1d_same_ref(out, w2, 1)
    out = jnp.maximum(_bn_ref(out, *bn2), 0.0)
    out = _conv1d_same_ref(out, w3, 1)
    out = jnp.maximum(_bn_ref(out, *bn3), 0.0)
    return out + identity


if __name__ == "__main__":
    # Small demo shapes; l_tile=16 forces a multi-tile grid so the halo and
    # tail-masking paths are exercised (L=40 -> 3 length tiles of 16).
    B, Cmid, K, L = 2, 4, 3, 40
    Cin = 4 * Cmid   # in_channels == out_channels*4 so the residual add matches

    key = jax.random.PRNGKey(0)
    ks = jax.random.split(key, 8)

    w1 = jax.random.normal(ks[0], (Cmid, Cin, 1), jnp.float32) * 0.1
    w2 = jax.random.normal(ks[1], (Cmid, Cmid, K), jnp.float32) * 0.1
    w3 = jax.random.normal(ks[2], (Cin, Cmid, 1), jnp.float32) * 0.1

    def bn_params(k, c):
        ka, kb, kc, kd = jax.random.split(k, 4)
        gamma = 1.0 + 0.1 * jax.random.normal(ka, (c,), jnp.float32)
        beta = 0.1 * jax.random.normal(kb, (c,), jnp.float32)
        mean = 0.1 * jax.random.normal(kc, (c,), jnp.float32)
        var = jax.random.uniform(kd, (c,), jnp.float32, 0.5, 1.5)
        return (gamma, beta, mean, var)

    bn1 = bn_params(ks[3], Cmid)
    bn2 = bn_params(ks[4], Cmid)
    bn3 = bn_params(ks[5], Cin)

    x = jax.random.normal(ks[6], (B, Cin, L), jnp.float32)

    run = jax.jit(functools.partial(bottleneck_block1d, l_tile=16))
    out = jax.block_until_ready(run(x, w1, w2, w3, bn1, bn2, bn3))
    ref = jax.block_until_ready(bottleneck_ref(x, w1, w2, w3, bn1, bn2, bn3))

    assert out.shape == (B, Cin, L)
    # bf16 matmul operands with f32 accumulation -> loosened tolerance vs the
    # pure-f32 reference (deliberate precision tradeoff, not a bug).
    err = float(jnp.max(jnp.abs(out - ref)))
    assert err < 5e-2, f"max err {err}"

    print("KERNEL_OK")
</pallas_src>

<mosaic_0001>
module attributes {stable_mosaic.version = 11 : i64} {
  func.func @_bottleneck_kernel(%arg0: i32, %arg1: i32, %arg2: memref<1x16x128xf32, #tpu.memory_space<vmem>>, %arg3: memref<1x8x128xf32, #tpu.memory_space<vmem>>, %arg4: memref<1x8x128xf32, #tpu.memory_space<vmem>>, %arg5: memref<128x128xbf16, #tpu.memory_space<vmem>>, %arg6: memref<384x128xbf16, #tpu.memory_space<vmem>>, %arg7: memref<128x128xbf16, #tpu.memory_space<vmem>>, %arg8: memref<1x128xf32, #tpu.memory_space<vmem>>, %arg9: memref<1x128xf32, #tpu.memory_space<vmem>>, %arg10: memref<1x128xf32, #tpu.memory_space<vmem>>, %arg11: memref<1x16x128xf32, #tpu.memory_space<vmem>>) attributes {dimension_semantics = [#tpu.dimension_semantics<parallel>, #tpu.dimension_semantics<parallel>], iteration_bounds = array<i64: 2, 3>, scalar_prefetch = 0 : i64, scratch_operands = 0 : i64, tpu.core_type = #tpu.core_type<tc>, window_params = [{transform_indices = @transform_0, window_bounds = array<i64: 1, 16, 128>}, {transform_indices = @transform_1, window_bounds = array<i64: 1, 8, 128>}, {transform_indices = @transform_2, window_bounds = array<i64: 1, 8, 128>}, {pipeline_mode = #tpu.pipeline_mode<synchronous>, transform_indices = @transform_3, window_bounds = array<i64: 128, 128>}, {pipeline_mode = #tpu.pipeline_mode<synchronous>, transform_indices = @transform_4, window_bounds = array<i64: 384, 128>}, {pipeline_mode = #tpu.pipeline_mode<synchronous>, transform_indices = @transform_5, window_bounds = array<i64: 128, 128>}, {pipeline_mode = #tpu.pipeline_mode<synchronous>, transform_indices = @transform_6, window_bounds = array<i64: 1, 128>}, {pipeline_mode = #tpu.pipeline_mode<synchronous>, transform_indices = @transform_7, window_bounds = array<i64: 1, 128>}, {pipeline_mode = #tpu.pipeline_mode<synchronous>, transform_indices = @transform_8, window_bounds = array<i64: 1, 128>}, {transform_indices = @transform_9, window_bounds = array<i64: 1, 16, 128>}]} {
    %c0 = arith.constant 0 : index
    %c0_0 = arith.constant 0 : index
    %c0_1 = arith.constant 0 : index
    %0 = vector.load %arg2[%c0, %c0_0, %c0_1] : memref<1x16x128xf32, #tpu.memory_space<vmem>>, vector<1x16x128xf32>
    %1 = vector.shape_cast %0 : vector<1x16x128xf32> to vector<16x128xf32>
    %c0_2 = arith.constant 0 : index
    %c0_3 = arith.constant 0 : index
    %c0_4 = arith.constant 0 : index
    %2 = vector.load %arg3[%c0_2, %c0_3, %c0_4] : memref<1x8x128xf32, #tpu.memory_space<vmem>>, vector<1x8x128xf32>
    %3 = vector.shape_cast %2 : vector<1x8x128xf32> to vector<8x128xf32>
    %c0_5 = arith.constant 0 : index
    %c0_6 = arith.constant 0 : index
    %c0_7 = arith.constant 0 : index
    %4 = vector.load %arg4[%c0_5, %c0_6, %c0_7] : memref<1x8x128xf32, #tpu.memory_space<vmem>>, vector<1x8x128xf32>
    %5 = vector.shape_cast %4 : vector<1x8x128xf32> to vector<8x128xf32>
    %6 = tpu.concatenate %3, %1, %5 in 0 : vector<8x128xf32>, vector<16x128xf32>, vector<8x128xf32> -> vector<32x128xf32>
    %7 = arith.truncf %6 : vector<32x128xf32> to vector<32x128xbf16>
    %c0_8 = arith.constant 0 : index
    %c0_9 = arith.constant 0 : index
    %8 = vector.load %arg5[%c0_8, %c0_9] : memref<128x128xbf16, #tpu.memory_space<vmem>>, vector<128x128xbf16>
    %cst = arith.constant dense<0.000000e+00> : vector<32x128xf32>
    %9 = tpu.matmul %7, %8, %cst {dimension_numbers = #tpu.dot_dimension_numbers<[1], [0], [0], [1], [0, 0, 1, 1], [], []>} : vector<32x128xbf16>, vector<128x128xbf16>, vector<32x128xf32> -> vector<32x128xf32>
    %c0_10 = arith.constant 0 : index
    %c0_11 = arith.constant 0 : index
    %10 = vector.load %arg8[%c0_10, %c0_11] : memref<1x128xf32, #tpu.memory_space<vmem>>, vector<1x128xf32>
    %11 = vector.broadcast %10 : vector<1x128xf32> to vector<32x128xf32>
    %12 = arith.addf %9, %11 : vector<32x128xf32>
    %cst_12 = arith.constant 0.000000e+00 : f32
    %13 = vector.broadcast %cst_12 : f32 to vector<32x128xf32>
    %14 = arith.maximumf %12, %13 : vector<32x128xf32>
    %15 = tpu.iota {dimensions = array<i32: 0>} : vector<32x1xi32>
    %c16_i32 = arith.constant 16 : i32
    %16 = arith.muli %arg1, %c16_i32 : i32
    %c8_i32 = arith.constant 8 : i32
    %17 = arith.subi %16, %c8_i32 : i32
    %18 = vector.broadcast %17 : i32 to vector<32x1xi32>
    %19 = arith.addi %15, %18 : vector<32x1xi32>
    %c0_i32 = arith.constant 0 : i32
    %20 = vector.broadcast %c0_i32 : i32 to vector<32x1xi32>
    %21 = arith.cmpi sge, %19, %20 : vector<32x1xi32>
    %c40_i32 = arith.constant 40 : i32
    %22 = vector.broadcast %c40_i32 : i32 to vector<32x1xi32>
    %23 = arith.cmpi slt, %19, %22 : vector<32x1xi32>
    %24 = arith.andi %21, %23 : vector<32x1xi1>
    %cst_13 = arith.constant 0.000000e+00 : f32
    %25 = vector.shape_cast %24 : vector<32x1xi1> to vector<32x1xi1>
    %26 = vector.broadcast %25 : vector<32x1xi1> to vector<32x128xi1>
    %27 = vector.broadcast %cst_13 : f32 to vector<32x128xf32>
    %28 = arith.select %26, %14, %27 : vector<32x128xi1>, vector<32x128xf32>
    %29 = arith.truncf %28 : vector<32x128xf32> to vector<32x128xbf16>
    %30 = vector.extract_strided_slice %29 {offsets = [7, 0], sizes = [16, 128], strides = [1, 1]} : vector<32x128xbf16> to vector<16x128xbf16>
    %31 = vector.extract_strided_slice %29 {offsets = [8, 0], sizes = [16, 128], strides = [1, 1]} : vector<32x128xbf16> to vector<16x128xbf16>
    %32 = vector.extract_strided_slice %29 {offsets = [9, 0], sizes = [16, 128], strides = [1, 1]} : vector<32x128xbf16> to vector<16x128xbf16>
    %33 = tpu.concatenate %30, %31, %32 in 1 : vector<16x128xbf16>, vector<16x128xbf16>, vector<16x128xbf16> -> vector<16x384xbf16>
    %c0_14 = arith.constant 0 : index
    %c0_15 = arith.constant 0 : index
    %34 = vector.load %arg6[%c0_14, %c0_15] : memref<384x128xbf16, #tpu.memory_space<vmem>>, vector<384x128xbf16>
    %cst_16 = arith.constant dense<0.000000e+00> : vector<16x128xf32>
    %35 = tpu.matmul %33, %34, %cst_16 {dimension_numbers = #tpu.dot_dimension_numbers<[1], [0], [0], [1], [0, 0, 1, 1], [], []>} : vector<16x384xbf16>, vector<384x128xbf16>, vector<16x128xf32> -> vector<16x128xf32>
    %c0_17 = arith.constant 0 : index
    %c0_18 = arith.constant 0 : index
    %36 = vector.load %arg9[%c0_17, %c0_18] : memref<1x128xf32, #tpu.memory_space<vmem>>, vector<1x128xf32>
    %37 = vector.broadcast %36 : vector<1x128xf32> to vector<16x128xf32>
    %38 = arith.addf %35, %37 : vector<16x128xf32>
    %cst_19 = arith.constant 0.000000e+00 : f32
    %39 = vector.broadcast %cst_19 : f32 to vector<16x128xf32>
    %40 = arith.maximumf %38, %39 : vector<16x128xf32>
    %41 = arith.truncf %40 : vector<16x128xf32> to vector<16x128xbf16>
    %c0_20 = arith.constant 0 : index
    %c0_21 = arith.constant 0 : index
    %42 = vector.load %arg7[%c0_20, %c0_21] : memref<128x128xbf16, #tpu.memory_space<vmem>>, vector<128x128xbf16>
    %cst_22 = arith.constant dense<0.000000e+00> : vector<16x128xf32>
    %43 = tpu.matmul %41, %42, %cst_22 {dimension_numbers = #tpu.dot_dimension_numbers<[1], [0], [0], [1], [0, 0, 1, 1], [], []>} : vector<16x128xbf16>, vector<128x128xbf16>, vector<16x128xf32> -> vector<16x128xf32>
    %c0_23 = arith.constant 0 : index
    %c0_24 = arith.constant 0 : index
    %44 = vector.load %arg10[%c0_23, %c0_24] : memref<1x128xf32, #tpu.memory_space<vmem>>, vector<1x128xf32>
    %45 = vector.broadcast %44 : vector<1x128xf32> to vector<16x128xf32>
    %46 = arith.addf %43, %45 : vector<16x128xf32>
    %cst_25 = arith.constant 0.000000e+00 : f32
    %47 = vector.broadcast %cst_25 : f32 to vector<16x128xf32>
    %48 = arith.maximumf %46, %47 : vector<16x128xf32>
    %49 = arith.addf %48, %1 : vector<16x128xf32>
    %c0_26 = arith.constant 0 : index
    %c0_27 = arith.constant 0 : index
    %c0_28 = arith.constant 0 : index
    %50 = vector.load %arg11[%c0_26, %c0_27, %c0_28] : memref<1x16x128xf32, #tpu.memory_space<vmem>>, vector<1x16x128xf32>
    %51 = vector.shape_cast %50 : vector<1x16x128xf32> to vector<16x128xf32>
    %52 = vector.shape_cast %49 : vector<16x128xf32> to vector<1x16x128xf32>
    tpu.vector_store %arg11[%c0_26, %c0_27, %c0_28], %52 {strides = array<i32>} : memref<1x16x128xf32, #tpu.memory_space<vmem>>, vector<1x16x128xf32>,
    return
  }
  func.func @transform_0(%arg0: i32, %arg1: i32) -> (i32, i32, i32) {
    %c0_i32 = arith.constant 0 : i32
    %c0_i32_0 = arith.constant 0 : i32
    return %arg0, %arg1, %c0_i32 : i32, i32, i32
  }
  func.func @transform_1(%arg0: i32, %arg1: i32) -> (i32, i32, i32) {
    %c2_i32 = arith.constant 2 : i32
    %0 = arith.muli %arg1, %c2_i32 : i32
    %c1_i32 = arith.constant 1 : i32
    %1 = arith.subi %0, %c1_i32 : i32
    %c0_i32 = arith.constant 0 : i32
    %2 = arith.maxsi %1, %c0_i32 : i32
    %c0_i32_0 = arith.constant 0 : i32
    %c0_i32_1 = arith.constant 0 : i32
    return %arg0, %2, %c0_i32_0 : i32, i32, i32
  }
  func.func @transform_2(%arg0: i32, %arg1: i32) -> (i32, i32, i32) {
    %c1_i32 = arith.constant 1 : i32
    %0 = arith.addi %arg1, %c1_i32 : i32
    %c2_i32 = arith.constant 2 : i32
    %1 = arith.muli %0, %c2_i32 : i32
    %c5_i32 = arith.constant 5 : i32
    %2 = arith.minsi %1, %c5_i32 : i32
    %c0_i32 = arith.constant 0 : i32
    %c0_i32_0 = arith.constant 0 : i32
    return %arg0, %2, %c0_i32 : i32, i32, i32
  }
  func.func @transform_3(%arg0: i32, %arg1: i32) -> (i32, i32) {
    %c0_i32 = arith.constant 0 : i32
    %c0_i32_0 = arith.constant 0 : i32
    %c0_i32_1 = arith.constant 0 : i32
    return %c0_i32, %c0_i32_0 : i32, i32
  }
  func.func @transform_4(%arg0: i32, %arg1: i32) -> (i32, i32) {
    %c0_i32 = arith.constant 0 : i32
    %c0_i32_0 = arith.constant 0 : i32
    %c0_i32_1 = arith.constant 0 : i32
    return %c0_i32, %c0_i32_0 : i32, i32
  }
  func.func @transform_5(%arg0: i32, %arg1: i32) -> (i32, i32) {
    %c0_i32 = arith.constant 0 : i32
    %c0_i32_0 = arith.constant 0 : i32
    %c0_i32_1 = arith.constant 0 : i32
    return %c0_i32, %c0_i32_0 : i32, i32
  }
  func.func @transform_6(%arg0: i32, %arg1: i32) -> (i32, i32) {
    %c0_i32 = arith.constant 0 : i32
    %c0_i32_0 = arith.constant 0 : i32
    %c0_i32_1 = arith.constant 0 : i32
    return %c0_i32, %c0_i32_0 : i32, i32
  }
  func.func @transform_7(%arg0: i32, %arg1: i32) -> (i32, i32) {
    %c0_i32 = arith.constant 0 : i32
    %c0_i32_0 = arith.constant 0 : i32
    %c0_i32_1 = arith.constant 0 : i32
    return %c0_i32, %c0_i32_0 : i32, i32
  }
  func.func @transform_8(%arg0: i32, %arg1: i32) -> (i32, i32) {
    %c0_i32 = arith.constant 0 : i32
    %c0_i32_0 = arith.constant 0 : i32
    %c0_i32_1 = arith.constant 0 : i32
    return %c0_i32, %c0_i32_0 : i32, i32
  }
  func.func @transform_9(%arg0: i32, %arg1: i32) -> (i32, i32, i32) {
    %c0_i32 = arith.constant 0 : i32
    %c0_i32_0 = arith.constant 0 : i32
    return %arg0, %arg1, %c0_i32 : i32, i32, i32
  }
}

</mosaic_0001>

<bundles_post_ra>
// kernel: bottleneck_block1d.1
= control target key start
LH: loop header
LB: loop body
LE: loop exit
PB: predicated region body
PF: predicated region fallthrough
CT: control target
= control target key end

     0   :  { %s1622_s30 = smov 0   ;;  %s1624_s10 = smov 0   ;;  %s1871_s0 = inlined_call_operand.vmem [shape: f32[2,48,128], index: 0, kind: input, shape index: {}, may-alias: {0,1,2}]   ;;  %s1872_s1 = inlined_call_operand.vmem [shape: f32[2,48,128], index: 1, kind: input, shape index: {}, may-alias: {0,1,2}]   ;;  %s1873_s2 = inlined_call_operand.vmem [shape: f32[2,48,128], index: 2, kind: input, shape index: {}, may-alias: {0,1,2}]   ;;  %s1874_s3 = inlined_call_operand.vmem [shape: bf16[128,128], index: 3, kind: input, shape index: {}]   ;;  %s1875_s4 = inlined_call_operand.vmem [shape: bf16[384,128], index: 4, kind: input, shape index: {}]   ;;  %s1876_s5 = inlined_call_operand.vmem [shape: bf16[128,128], index: 5, kind: input, shape index: {}]   ;;  %s1877_s6 = inlined_call_operand.vmem [shape: f32[1,128], index: 6, kind: input, shape index: {}]   ;;  %s1878_s7 = inlined_call_operand.vmem [shape: f32[1,128], index: 7, kind: input, shape index: {}]   ;;  %s1879_s8 = inlined_call_operand.vmem [shape: f32[1,128], index: 8, kind: input, shape index: {}]   ;;  %s1880_s9 = inlined_call_operand.vmem [shape: f32[2,48,128], index: 9, kind: output, shape index: {}]  }
   0x1   :  { %s1626_s11 = smov 0   ;;  %s1628_s12 = smov 0  }
   0x2   :  { %s1630_s13 = smov 0  }
   0x3 LB: > { %s28_s14 = sadd.s32 1, %s1560_s11  ;;  %s31_s15 = sadd.s32 1, %s1564_s12  ;;  %s1568_s13 = sphi %s1630_s13, %s19_s13   ;;  %s1564_s12 = sphi %s1628_s12, %s1885_s12   ;;  %s1560_s11 = sphi %s1626_s11, %s1884_s11   ;;  %s1556_s10 = sphi %s1624_s10, %s1883_s10   ;;  %s1552_s30 = sphi %s1622_s30, %s1882_s30  }
   0x4   : > { %p29_p0 = scmp.ge.s32.totalorder %s28_s14, 3  ;;  %p1264_p1 = scmp.ge.s32.totalorder %s1568_s13, 1 }
   0x5   : > { %p370_p2 = scmp.lt.s32.totalorder %s1568_s13, 7 }
   0x6   : > { %s1887_s14 = smov (%p29_p0, %s28_s14), 0  ;;  %s1889_s15 = smov (!%p29_p0, %s31_s15), %s1564_s12 }
   0x7   : > { %p371_p3 = pnand %p1264_p1, %p370_p2  ;;  %p33_p4 = scmp.ge.s32.totalorder %s1889_s15, 2 }
   0x8   : > { %v1490_v0 = vld [vmem:[%s1874_s3] sm:$0xff] (!%p371_p3)   ;;  %s1658_s18 = sshll.u32 (!%p371_p3), %s1552_s30, 1  ;;  %v1491_v1 = vld [vmem:[%s1874_s3 + $0x8] sm:$0xff] (!%p371_p3)   ;;  %p439_p5 = scmp.lt.s32.totalorder (!%p371_p3), %s1556_s10, 1  ;;  %v1492_v2 = vld [vmem:[%s1874_s3 + $0x10] sm:$0xff] (!%p371_p3)   ;;  %v1570_v19 = vmov (!%p371_p3), 0.0   ;;  %v621_v39 = vlaneseq (!%p371_p3) }
   0x9   : > { %s1891_s15 = smov (%p33_p4, %s1889_s15), 0  ;;  %374 = sbr.rel (%p371_p3) target bundleno = 725 (0x2d5), region = 56 }
   0xa   : > { %1387 = vmatprep.subr.bf16.mxu0 (!%p371_p3), %v1490_v0  ;;  %p441_p6 = scmp.lt.s32.totalorder (!%p371_p3), %s1658_s18, 5  ;;  %s1268_s25 = sadd.s32 (!%p371_p3), 4294967295, %s1658_s18  ;;  %v1493_v3 = vld [vmem:[%s1874_s3 + $0x18] sm:$0xff] (!%p371_p3)   ;;  %v1499_v4 = vld [vmem:[%s1875_s4 + $0x40] sm:$0xff] (!%p371_p3)   ;;  %v1502_v7 = vld [vmem:[%s1875_s4 + $0x48] sm:$0xff] (!%p371_p3)   ;;  %vm1571_vm0 = vmmov (!%p371_p3), 0  }
   0xb   : > { %1388 = vmatpush3.bf16.msra.mxu0 (!%p371_p3), %v1490_v0  ;;  %p450_p7 = scmp.gt.s32.totalorder (!%p371_p3), %s1268_s25, 0  ;;  %p1269_p8 = scmp.lt.s32.totalorder (!%p371_p3), %s1268_s25, 5  ;;  %v1494_v5 = vld [vmem:[%s1874_s3 + $0x20] sm:$0xff] (!%p371_p3)   ;;  %1347 = vmatprep.subr.bf16.mxu1 (!%p371_p3), %v1499_v4  ;;  %v1495_v8 = vld [vmem:[%s1874_s3 + $0x28] sm:$0xff] (!%p371_p3)   ;;  %v1496_v13 = vld [vmem:[%s1874_s3 + $0x30] sm:$0xff] (!%p371_p3)   ;;  %v622_v40 = vshrl.u32 (!%p371_p3), %v621_v39, 7 }
   0xc   : > { %1389 = vmatprep.subr.bf16.mxu0 (!%p371_p3), %v1491_v1  ;;  %v1501_v6 = vld [vmem:[%s1875_s4] sm:$0xff] (!%p371_p3)   ;;  %v1504_v10 = vld [vmem:[%s1875_s4 + $0x8] sm:$0xff] (!%p371_p3)   ;;  %v1497_v14 = vld [vmem:[%s1874_s3 + $0x38] sm:$0xff] (!%p371_p3)   ;;  %s1291_s27 = sshll.u32 (!%p371_p3), %s1552_s30, 4  ;;  %vm677_vm13 = vcmask (!%p371_p3), 1046528  }
   0xd   : > { %1348 = vmatpush3.bf16.msra.mxu1 (!%p371_p3), %v1501_v6  ;;  %v1498_v17 = vld [vmem:[%s1875_s4 + $0x80] sm:$0xff] (!%p371_p3)   ;;  %v1500_v20 = vld [vmem:[%s1875_s4 + $0x88] sm:$0xff] (!%p371_p3)   ;;  %v1503_v21 = vld [vmem:[%s1875_s4 + $0x90] sm:$0xff] (!%p371_p3)   ;;  %s1292_s16 = sadd.s32 (!%p371_p3), 4294967288, %s1291_s27  ;;  %v624_v41 = vadd.s32 (!%p371_p3), 16, %v622_v40  ;;  %v625_v43 = vadd.s32 (!%p371_p3), 24, %v622_v40 }
   0xe   : > { %1349 = vmatprep.subr.bf16.mxu1 (!%p371_p3), %v1502_v7  ;;  %v1505_v22 = vld [vmem:[%s1875_s4 + $0x50] sm:$0xff] (!%p371_p3)   ;;  %v1506_v23 = vld [vmem:[%s1875_s4 + $0x98] sm:$0xff] (!%p371_p3)   ;;  %v1509_v26 = vld [vmem:[%s1875_s4 + $0xa0] sm:$0xff] (!%p371_p3)   ;;  %v628_v42 = vstv (!%p371_p3), %s1292_s16  ;;  %v623_v44 = vadd.s32 (!%p371_p3), 8, %v622_v40  ;;  %vm659_vm14 = vsmask.f32 (!%p371_p3), 7424 }
   0xf   : > { %1390 = vmatpush3.bf16.msra.mxu0 (!%p371_p3), %v1491_v1  ;;  %v1507_v24 = vld [vmem:[%s1875_s4 + $0x10] sm:$0xff] (!%p371_p3)   ;;  %v1508_v25 = vld [vmem:[%s1875_s4 + $0x58] sm:$0xff] (!%p371_p3)   ;;  %v1511_v28 = vld [vmem:[%s1875_s4 + $0x60] sm:$0xff] (!%p371_p3)   ;;  %v631_v45 = vadd.s32 (!%p371_p3), %v628_v42, %v624_v41  ;;  %v629_v46 = vadd.s32 (!%p371_p3), %v628_v42, %v622_v40  ;;  %v632_v47 = vadd.s32 (!%p371_p3), %v628_v42, %v625_v43  ;;  %vm736_vm15 = vsmask.f32 (!%p371_p3), 4352 }
  0x10   : > { %s1893_s10 = smov (!%p439_p5, %s1556_s10), 1  ;;  %1391 = vmatprep.subr.bf16.mxu0 %v1492_v2  ;;  %s1895_s25 = smov (!%p450_p7, %s1268_s25), 0  ;;  %v1510_v27 = vld [vmem:[%s1875_s4 + $0x18] sm:$0xff]   ;;  %v1512_v29 = vld [vmem:[%s1875_s4 + $0xa8] sm:$0xff]   ;;  %v1513_v30 = vld [vmem:[%s1875_s4 + $0x20] sm:$0xff]   ;;  %v630_v49 = vadd.s32 %v628_v42, %v623_v44 }
  0x11   : > { %s442_s23 = scalar_select %p441_p6, %s1658_s18, 5  ;;  %1350 = vmatpush3.bf16.msra.mxu1 %v1504_v10  ;;  %v1514_v31 = vld [vmem:[%s1875_s4 + $0x68] sm:$0xff]   ;;  %v1515_v32 = vld [vmem:[%s1875_s4 + $0xb0] sm:$0xff]   ;;  %v1518_v35 = vld [vmem:[%s1875_s4 + $0xb8] sm:$0xff]   ;;  %vm635_vm1 = vcmp.ge.s32.totalorder %v631_v45, 0  ;;  %vm639_vm2 = vcmp.lt.s32.totalorder %v631_v45, 40 }
  0x12   : > { %s1668_s24 = smul.u32 6, %s1893_s10  ;;  %s1897_s25 = smov (!%p1269_p8, %s1895_s25), 5  ;;  %1351 = vmatprep.subr.bf16.mxu1 %v1505_v22  ;;  %v1516_v33 = vld [vmem:[%s1875_s4 + $0x28] sm:$0xff]   ;;  %v1517_v34 = vld [vmem:[%s1875_s4 + $0x70] sm:$0xff]   ;;  %v1520_v37 = vld [vmem:[%s1875_s4 + $0x78] sm:$0xff]   ;;  %vm633_vm3 = vcmp.ge.s32.totalorder %v629_v46, 0 }
  0x13   : > { %1392 = vmatpush3.bf16.msra.mxu0 %v1492_v2  ;;  %v1519_v36 = vld [vmem:[%s1875_s4 + $0x30] sm:$0xff]   ;;  %v1521_v38 = vld [vmem:[%s1875_s4 + $0x38] sm:$0xff]   ;;  %v1282_v48 = vld [vmem:[%s1877_s6] ss:$0 sm:$0xff]  ;;  %vm637_vm4 = vcmp.lt.s32.totalorder %v629_v46, 40  ;;  %vm636_vm5 = vcmp.ge.s32.totalorder %v632_v47, 0 }
  0x14   : > { %s444_s26 = sadd.s32 %s1668_s24, %s442_s23  ;;  %s1336_s23 = sadd.s32 2, %s1658_s18  ;;  %1393 = vmatprep.subr.bf16.mxu0 %v1493_v3  ;;  %vm640_vm6 = vcmp.lt.s32.totalorder %v632_v47, 40  ;;  %vm643_vm7 = vmand %vm635_vm1, %vm639_vm2  ;;  %vm634_vm8 = vcmp.ge.s32.totalorder %v630_v49, 0  ;;  %vm638_vm9 = vcmp.lt.s32.totalorder %v630_v49, 40  ;;  %v1522_v47 = vld [vmem:[%s1876_s5] sm:$0xff]   ;;  %v1523_v49 = vld [vmem:[%s1876_s5 + $0x8] sm:$0xff]  }
  0x15   : > { %s1675_s29 = sshll.u32 %s444_s26, 3  ;;  %p1693_p9 = scmp.lt.s32.totalorder %s1336_s23, 5  ;;  %1352 = vmatpush3.bf16.msra.mxu1 %v1507_v24  ;;  %vm641_vm10 = vmand %vm633_vm3, %vm637_vm4 }
  0x16   : > { %s1687_s22 = scalar_lea.vmem %s1871_s0, %s1675_s29  ;;  %s457_s18 = sadd.s32 %s1668_s24, %s1897_s25  ;;  %1353 = vmatprep.subr.bf16.mxu1 %v1508_v25  ;;  %vm644_vm11 = vmand %vm636_vm5, %vm640_vm6 }
  0x17   : > { %v1705_v9 = vld [vmem:[%s1687_s22] sm:$0xff]  ;;  %1394 = vmatpush3.bf16.msra.mxu0 %v1493_v3  ;;  %s1274_s20 = sshll.u32 %s457_s18, 3  ;;  %s1899_s23 = smov (!%p1693_p9, %s1336_s23), 5  ;;  %v1729_v15 = vld [vmem:[%s1687_s22 + $0x8] sm:$0xff]  ;;  %vm642_vm12 = vmand %vm634_vm8, %vm638_vm9 }
  0x18   : > { %1395 = vmatprep.subr.bf16.mxu0 %v1494_v5  ;;  %s459_s17 = scalar_lea.vmem %s1872_s1, %s1274_s20  ;;  %s1901_s23 = smov (!%p1693_p9, %s1899_s23), 5 }
  0x19   : > { %v493_v11 = vld [vmem:[%s459_s17] sm:$0xff]  ;;  %s473_s19 = sadd.s32 %s1668_s24, %s1901_s23  ;;  %1354 = vmatpush3.bf16.msra.mxu1 %v1510_v27 }
  0x1a   : > { %v495_v12 = vpack.c.bf16 %v1705_v9, %v493_v11  ;;  %s1279_s18 = sshll.u32 %s473_s19, 3  ;;  %1355 = vmatprep.subr.bf16.mxu1 %v1511_v28 }
  0x1b   : > { %1396 = vmatpush3.bf16.msra.mxu0 %v1494_v5  ;;  %s475_s26 = scalar_lea.vmem %s1873_s2, %s1279_s18  ;;  %s488_s18 = scalar_lea.vmem %s1880_s9, %s1675_s29 }
  0x1c   : > { %1397 = vmatprep.subr.bf16.mxu0 %v1495_v8  ;;  %1403 = vmatprep.mubr.bf16.mxu0 %v495_v12  ;;  %v494_v16 = vld [vmem:[%s475_s26] sm:$0xff] }
  0x1d   : > { %v496_v18 = vpack.c.bf16 %v494_v16, %v1729_v15  ;;  %1356 = vmatpush3.bf16.msra.mxu1 %v1513_v30 }
  0x1e   : > { %1357 = vmatprep.subr.bf16.mxu1 %v1514_v31 }
  0x1f   : > { %1398 = vmatpush3.bf16.msra.mxu0 %v1495_v8 }
  0x20   : > { %1399 = vmatprep.subr.bf16.mxu0 %v1496_v13 }
  0x21   : > { %1358 = vmatpush3.bf16.msra.mxu1 %v1516_v33 }
  0x22   : > { %1359 = vmatprep.subr.bf16.mxu1 %v1517_v34 }
  0x23   : > { %1400 = vmatpush3.bf16.msra.mxu0 %v1496_v13 }
  0x24   : > { %1401 = vmatprep.subr.bf16.mxu0 %v1497_v14 }
  0x25   : > { %1360 = vmatpush3.bf16.msra.mxu1 %v1519_v36 }
  0x26   : > { %1361 = vmatprep.subr.bf16.mxu1 %v1520_v37 }
  0x27   : > { %1402 = vmatpush3.bf16.msra.mxu0 %v1497_v14 }
  0x28   : > { %1407 = vmatprep.subr.bf16.mxu0 %v1570_v19 }
  0x29   : > { %1362 = vmatpush3.bf16.msra.mxu1 %v1521_v38 }
  0x2a   : > { %1404 = vmatmul.mubr.bf16.vlgmr.msra.gmra.mrb[0].mxu0 %v496_v18  ;;  %1427 = vmatprep.subr.bf16.mxu1 %v1570_v19 }
  0x2b   : > { %1408 = vmatpush3.bf16.msra.mxu0 %v1498_v17  ;;  %1423 = vmatprep.mubr.msk.bf16.mxu0 %vm1571_vm0, %v1570_v19 }
  0x2c   : > { %1409 = vmatprep.subr.bf16.mxu0 %v1570_v19 }
  0x2f   : > { %1410 = vmatpush3.bf16.msra.mxu0 %v1500_v20 }
  0x30   : > { %1411 = vmatprep.subr.bf16.mxu0 %v1570_v19 }
  0x33   : > { %1412 = vmatpush3.bf16.msra.mxu0 %v1503_v21 }
  0x34   : > { %1413 = vmatprep.subr.bf16.mxu0 %v1570_v19 }
  0x37   : > { %1414 = vmatpush3.bf16.msra.mxu0 %v1506_v23 }
  0x38   : > { %1415 = vmatprep.subr.bf16.mxu0 %v1570_v19 }
  0x3b   : > { %1416 = vmatpush3.bf16.msra.mxu0 %v1509_v26 }
  0x3c   : > { %1417 = vmatprep.subr.bf16.mxu0 %v1570_v19 }
  0x3f   : > { %1418 = vmatpush3.bf16.msra.mxu0 %v1512_v29 }
  0x40   : > { %1419 = vmatprep.subr.bf16.mxu0 %v1570_v19 }
  0x43   : > { %1420 = vmatpush3.bf16.msra.mxu0 %v1515_v32 }
  0x44   : > { %1421 = vmatprep.subr.bf16.mxu0 %v1570_v19 }
  0x47   : > { %1422 = vmatpush3.bf16.msra.mxu0 %v1518_v35 }
  0xfd   : > { %v1405_v50 = vpop.f32.mrb[0].mxu0 }
  0xfe   : > { %v611_v51 = vadd.f32 %v1405_v50, %v1282_v48  ;;  %v602_v52 = vpop.f32.mrb[1].mxu0  ;;  %v1524_v50 = vld [vmem:[%s1876_s5 + $0x10] sm:$0xff]  }
  0xff   : > { %v603_v53 = vadd.f32 %v1282_v48, %v602_v52  ;;  %v1406_v54 = vpop.f32.mrb[2].mxu0  ;;  %v1526_v52 = vld [vmem:[%s1876_s5 + $0x20] sm:$0xff]  }
 0x100   : > { %v619_v55 = vmax.f32 %v611_v51, 0.0  ;;  %v614_v56 = vadd.f32 %v1406_v54, %v1282_v48  ;;  %v605_v57 = vpop.f32.mrb[3].mxu0  ;;  %v1525_v51 = vld [vmem:[%s1876_s5 + $0x18] sm:$0xff]   ;;  %v1528_v54 = vld [vmem:[%s1876_s5 + $0x30] sm:$0xff]  }
 0x101   : > { %v617_v58 = vmax.f32 %v603_v53, 0.0  ;;  %v606_v59 = vadd.f32 %v1282_v48, %v605_v57  ;;  %v1527_v53 = vld [vmem:[%s1876_s5 + $0x28] sm:$0xff]  }
 0x102   : > { %v620_v60 = vmax.f32 %v614_v56, 0.0  ;;  %v655_v62 = vsel %vm643_vm7, %v619_v55, 0.0  ;;  %v1529_v55 = vld [vmem:[%s1876_s5 + $0x38] sm:$0xff]  }
 0x103   : > { %v618_v61 = vmax.f32 %v606_v59, 0.0  ;;  %v653_v0 = vsel %vm641_vm10, %v617_v58, 0.0 }
 0x104   : > { %v656_v63 = vsel %vm644_vm11, %v620_v60, 0.0 }
 0x105   : > { %v658_v1 = vpack.c.bf16 %v656_v63, %v655_v62  ;;  %v654_v2 = vsel %vm642_vm12, %v618_v61, 0.0  ;;  %v1293_v61 = vld [vmem:[%s1878_s7] ss:$0 sm:$0xff] }
 0x106   : > { %v657_v3 = vpack.c.bf16 %v654_v2, %v653_v0 }
 0x107   : > { %v668_v4 = vshll.u32 %v658_v1, 16  ;;  %v672_v5 = vshrl.u32 %v658_v1, 16  ;;  %v679_v6 = vrot.slane %v658_v1, 1 }
 0x108   : > { %v661_v7 = vshrl.u32 %v657_v3, 16  ;;  %v663_v8 = vshll.u32 %v657_v3, 16  ;;  %v678_v10 = vrot.slane %v657_v3, 1 }
 0x109   : > { %v670_v11 = vrot.slane %v668_v4, 1  ;;  %v770_v12 = vshrl.u32 %v679_v6, 16  ;;  %v773_v13 = vshll.u32 %v679_v6, 16  ;;  %v740_v14 = vrot.slane %v672_v5, 3 }
 0x10a   : > { %v665_v16 = vrot.slane %v663_v8, 1  ;;  %v680_v17 = vsel %vm677_vm13, %v678_v10, %v679_v6  ;;  %v737_v18 = vrot.slane %v661_v7, 3  ;;  %v738_v20 = vrot.slane %v663_v8, 4  ;;  %v1318_v10 = vld [vmem:[%s1879_s8] ss:$0 sm:$0xff] }
 0x10b   : > { %v762_v21 = vshrl.u32 %v680_v17, 16  ;;  %v765_v22 = vshll.u32 %v680_v17, 16  ;;  %v772_v23 = vrot.slane %v770_v12, 3  ;;  %v775_v24 = vrot.slane %v773_v13, 4 }
 0x10c   : > { %v666_v25 = vor.u32 %v665_v16, %v661_v7  ;;  %v674_v26 = vor.u32 %v672_v5, %v670_v11  ;;  %v739_v27 = vor.u32 %v738_v20, %v737_v18  ;;  %v741_v28 = vrot.slane %v668_v4, 4 }
 0x10d   : > { %v764_v29 = vrot.slane %v762_v21, 3  ;;  %v767_v30 = vrot.slane %v765_v22, 4  ;;  %v776_v36 = vor.u32 %v775_v24, %v772_v23 }
 0x10e   : > { %v671_v31 = vsel %vm659_vm14, %v666_v25, %v670_v11  ;;  %v753_v32 = vshrl.u32 %v674_v26, 16  ;;  %v756_v33 = vshll.u32 %v674_v26, 16  ;;  %v742_v34 = vor.u32 %v741_v28, %v740_v14 }
 0x10f   : > { %v768_v35 = vor.u32 %v767_v30, %v764_v29  ;;  %v745_v37 = vshrl.u32 %v671_v31, 16  ;;  %v748_v38 = vshll.u32 %v671_v31, 16 }
 0x110   : > { %v755_v39 = vrot.slane %v753_v32, 3  ;;  %v758_v40 = vrot.slane %v756_v33, 4  ;;  %v743_v41 = vsel %vm736_vm15, %v739_v27, %v742_v34 }
 0x111   : > { %v777_v42 = vsel %vm736_vm15, %v768_v35, %v776_v36  ;;  %v747_v43 = vrot.slane %v745_v37, 3  ;;  %v750_v44 = vrot.slane %v748_v38, 4 }
 0x112   : > { %1424 = vmatmul.mubr.bf16.vlgmr.msra.gmra.mrb[4].mxu0 %v777_v42  ;;  %v759_v46 = vor.u32 %v758_v40, %v755_v39 }
 0x113   : > { %v751_v45 = vor.u32 %v750_v44, %v747_v43 }
 0x115   : > { %v760_v48 = vsel %vm736_vm15, %v751_v45, %v759_v46 }
 0x116   : > { %957 = vmatprep.mubr.bf16.mxu1 %v760_v48 }
 0x117   : > { %958 = vmatmul.mubr.bf16.vlgmr.msra.gmra.mrb[0].mxu1 %v743_v41 }
 0x118   : > { %1428 = vmatpush3.bf16.msra.mxu1 %v1522_v47  ;;  %1443 = vmatprep.mubr.msk.bf16.mxu1 %vm1571_vm0, %v1570_v19 }
 0x119   : > { %1429 = vmatprep.subr.bf16.mxu1 %v1570_v19 }
 0x11c   : > { %1430 = vmatpush3.bf16.msra.mxu1 %v1523_v49 }
 0x11d   : > { %1431 = vmatprep.subr.bf16.mxu1 %v1570_v19 }
 0x120   : > { %1432 = vmatpush3.bf16.msra.mxu1 %v1524_v50 }
 0x121   : > { %1433 = vmatprep.subr.bf16.mxu1 %v1570_v19 }
 0x124   : > { %1434 = vmatpush3.bf16.msra.mxu1 %v1525_v51 }
 0x125   : > { %1435 = vmatprep.subr.bf16.mxu1 %v1570_v19 }
 0x128   : > { %1436 = vmatpush3.bf16.msra.mxu1 %v1526_v52 }
 0x129   : > { %1437 = vmatprep.subr.bf16.mxu1 %v1570_v19 }
 0x12c   : > { %1438 = vmatpush3.bf16.msra.mxu1 %v1527_v53 }
 0x12d   : > { %1439 = vmatprep.subr.bf16.mxu1 %v1570_v19 }
 0x130   : > { %1440 = vmatpush3.bf16.msra.mxu1 %v1528_v54 }
 0x131   : > { %1441 = vmatprep.subr.bf16.mxu1 %v1570_v19 }
 0x134   : > { %1442 = vmatpush3.bf16.msra.mxu1 %v1529_v55 }
 0x1e5   : > { %v1000_v56 = vpop.f32.mrb[4].mxu0 }
 0x1e6   : > { %v1425_v57 = vpop.f32.mrb[5].mxu0 }
 0x1e7   : > { %v1003_v58 = vpop.f32.mrb[6].mxu0 }
 0x1e8   : > { %v1426_v59 = vpop.f32.mrb[7].mxu0 }
 0x1ea   : > { %v1363_v60 = vpop.f32.mrb[0].mxu1 }
 0x1eb   : > { %v1364_v62 = vpop.f32.mrb[1].mxu1 }
 0x1ec   : > { %v1365_v63 = vadd.f32 %v1364_v62, %v1363_v60  ;;  %v1366_v0 = vpop.f32.mrb[2].mxu1 }
 0x1ed   : > { %v1367_v1 = vpop.f32.mrb[3].mxu1 }
 0x1ee   : > { %v960_v2 = vadd.f32 %v1365_v63, %v1293_v61  ;;  %v1368_v19 = vadd.f32 %v1367_v1, %v1366_v0 }
 0x1f0   : > { %v1001_v3 = vadd.f32 %v1000_v56, %v960_v2  ;;  %v963_v4 = vadd.f32 %v1368_v19, %v1293_v61 }
 0x1f2   : > { %v1004_v5 = vadd.f32 %v1003_v58, %v963_v4  ;;  %v1007_v6 = vmax.f32 %v1001_v3, 0.0 }
 0x1f4   : > { %v1008_v7 = vmax.f32 %v1004_v5, 0.0 }
 0x1f6   : > { %v1009_v8 = vpack.c.bf16 %v1008_v7, %v1007_v6 }
 0x1f8   : > { %1444 = vmatmul.mubr.bf16.vlgmr.msra.gmra.mrb[4].mxu1 %v1009_v8 }
 0x2cb   : > { %v1115_v11 = vpop.f32.mrb[4].mxu1 }
 0x2cc   : > { %v1116_v12 = vadd.f32 %v1318_v10, %v1115_v11  ;;  %v1445_v13 = vpop.f32.mrb[5].mxu1 }
 0x2cd   : > { %v1118_v14 = vpop.f32.mrb[6].mxu1 }
 0x2ce   : > { %v1122_v16 = vmax.f32 %v1116_v12, 0.0  ;;  %v1119_v17 = vadd.f32 %v1318_v10, %v1118_v14  ;;  %v1446_v18 = vpop.f32.mrb[7].mxu1 }
 0x2d0   : > { %v1124_v20 = vadd.f32 %v1122_v16, %v1705_v9  ;;  %v1123_v21 = vmax.f32 %v1119_v17, 0.0 }
 0x2d2   : > { %1126 = vst [vmem:[%s488_s18] sm:$0xff] %v1124_v20  ;;  %v1125_v22 = vadd.f32 %v1123_v21, %v1729_v15 }
 0x2d4   : > { %1127 = vst [vmem:[%s488_s18 + $0x8] sm:$0xff] %v1125_v22 }
 0x2d5 PF: > { %s19_s13 = sadd.s32 1, %s1568_s13   ;;  %s1882_s30 = smov %s1560_s11 }
 0x2d6   : > { %p16_p10 = scmp.ge.s32.totalorder %s19_s13, 8   ;;  %s1883_s10 = smov %s1564_s12 }
 0x2d7   : > { %s1884_s11 = smov %s1887_s14  ;;  %s1885_s12 = smov %s1891_s15 }
 0x2d8   :  { %18 = sbr.rel (!%p16_p10) target bundleno = 3 (0x3), region = 92 }

</bundles_post_ra>
